<compile_context>
chip_gen: v7x
topology: tpu7x:2x2x1
jax: 0.10.0
libtpu: 0.0.40
codegen_flags: <defaults>
</compile_context>

<pallas_src>
import math

import jax
import jax.numpy as jnp
from jax import lax
from jax.experimental import pallas as pl
from jax.experimental.pallas import tpu as pltpu


def _round_up(x: int, m: int) -> int:
    return ((x + m - 1) // m) * m


def _geglu_kernel(x_ref, wh_ref, wg_ref, bh_ref, bg_ref, o_ref, acc_h, acc_g):
    # x_ref:  (tm, tk)          input tile
    # wh_ref: (tn, tk)          hidden-half weight tile (PyTorch (out, in) layout)
    # wg_ref: (tn, tk)          gate-half weight tile
    # bh_ref: (1, tn), bg_ref: (1, tn)
    # o_ref:  (tm, tn)
    # acc_h, acc_g: (tm, tn) f32 accumulators (VMEM scratch)
    k = pl.program_id(2)
    nk = pl.num_programs(2)

    @pl.when(k == 0)
    def _init():
        acc_h[...] = jnp.zeros_like(acc_h)
        acc_g[...] = jnp.zeros_like(acc_g)

    x = x_ref[...]
    # Contract x's K (dim 1) with w's K (dim 1): (tm, tk) x (tn, tk) -> (tm, tn).
    dn = (((1,), (1,)), ((), ()))
    acc_h[...] += lax.dot_general(x, wh_ref[...], dn,
                                  preferred_element_type=jnp.float32)
    acc_g[...] += lax.dot_general(x, wg_ref[...], dn,
                                  preferred_element_type=jnp.float32)

    @pl.when(k == nk - 1)
    def _epilogue():
        hidden = acc_h[...] + bh_ref[...].astype(jnp.float32)
        gate = acc_g[...] + bg_ref[...].astype(jnp.float32)
        # Exact (erf-based) GELU, matching F.gelu default; f32 epilogue, single
        # downcast at the final store.
        gelu_gate = 0.5 * gate * (1.0 + lax.erf(gate * (1.0 / math.sqrt(2.0))))
        o_ref[...] = (hidden * gelu_gate).astype(o_ref.dtype)


def geglu(x, weight, bias, *, tm=256, tn=256, tk=512):
    """GEGLU forward.

    x:      (..., dim_in)
    weight: (2*dim_out, dim_in)   -- PyTorch nn.Linear layout (NOT transposed)
    bias:   (2*dim_out,)
    returns (..., dim_out)
    """
    dim_in = x.shape[-1]
    two_dim_out = weight.shape[0]
    dim_out = two_dim_out // 2

    lead_shape = x.shape[:-1]
    m = math.prod(lead_shape) if lead_shape else 1

    # Clamp tiles to the (rounded-up) problem dims, keeping (8, 128) alignment.
    tm = _round_up(min(tm, _round_up(m, 8)), 8)
    tn = _round_up(min(tn, _round_up(dim_out, 128)), 128)
    tk = _round_up(min(tk, _round_up(dim_in, 128)), 128)

    m_p = _round_up(m, tm)
    n_p = _round_up(dim_out, tn)
    k_p = _round_up(dim_in, tk)

    x2d = x.reshape(m, dim_in)
    if (m_p, k_p) != (m, dim_in):
        x2d = jnp.pad(x2d, ((0, m_p - m), (0, k_p - dim_in)))

    if (n_p, k_p) != (dim_out, dim_in):
        # Pad each half separately so the halves stay block-aligned.
        w2 = jnp.zeros((2 * n_p, k_p), weight.dtype)
        w2 = w2.at[:dim_out, :dim_in].set(weight[:dim_out])
        w2 = w2.at[n_p:n_p + dim_out, :dim_in].set(weight[dim_out:])
        b2 = jnp.zeros((1, 2 * n_p), bias.dtype)
        b2 = b2.at[0, :dim_out].set(bias[:dim_out])
        b2 = b2.at[0, n_p:n_p + dim_out].set(bias[dim_out:])
    else:
        w2 = weight
        b2 = bias.reshape(1, two_dim_out)

    gate_off = n_p // tn  # block offset of the gate half along N

    def _x_map(i, j, k):
        return (i, k)

    def _wh_map(i, j, k):
        return (j, k)

    def _wg_map(i, j, k):
        return (j + gate_off, k)

    def _bh_map(i, j, k):
        return (0, j)

    def _bg_map(i, j, k):
        return (0, j + gate_off)

    def _o_map(i, j, k):
        return (i, j)

    grid = (m_p // tm, n_p // tn, k_p // tk)

    itemsize_in = jnp.dtype(x.dtype).itemsize
    cost = pl.CostEstimate(
        flops=2 * m_p * k_p * (2 * n_p),
        transcendentals=m_p * n_p,
        bytes_accessed=(m_p * k_p * itemsize_in
                        + 2 * n_p * k_p * jnp.dtype(weight.dtype).itemsize
                        + m_p * n_p * itemsize_in),
    )

    out2d = pl.pallas_call(
        _geglu_kernel,
        out_shape=jax.ShapeDtypeStruct((m_p, n_p), x.dtype),
        grid_spec=pltpu.PrefetchScalarGridSpec(
            num_scalar_prefetch=0,
            grid=grid,
            in_specs=[
                pl.BlockSpec((tm, tk), _x_map),
                pl.BlockSpec((tn, tk), _wh_map),
                pl.BlockSpec((tn, tk), _wg_map),
                pl.BlockSpec((1, tn), _bh_map),
                pl.BlockSpec((1, tn), _bg_map),
            ],
            out_specs=pl.BlockSpec((tm, tn), _o_map),
            scratch_shapes=[
                pltpu.VMEM((tm, tn), jnp.float32),
                pltpu.VMEM((tm, tn), jnp.float32),
            ],
        ),
        compiler_params=pltpu.CompilerParams(
            dimension_semantics=("parallel", "parallel", "arbitrary"),
            vmem_limit_bytes=32 * 1024 * 1024,
        ),
        cost_estimate=cost,
    )(x2d, w2, w2, b2, b2)

    out2d = out2d[:m, :dim_out]
    return out2d.reshape(*lead_shape, dim_out)


def _reference_geglu(x, weight, bias):
    h = jnp.einsum("...i,oi->...o", x, weight) + bias
    hidden, gate = jnp.split(h, 2, axis=-1)
    gelu_gate = 0.5 * gate * (1.0 + lax.erf(gate / math.sqrt(2.0)))
    return hidden * gelu_gate


if __name__ == "__main__":
    key = jax.random.PRNGKey(0)

    def _make(k, batch, seq, dim_in, dim_out, dtype=jnp.float32):
        kx, kw, kb = jax.random.split(k, 3)
        bound = 1.0 / math.sqrt(dim_in)
        w = jax.random.uniform(kw, (2 * dim_out, dim_in), dtype=dtype,
                               minval=-bound, maxval=bound)
        b = jax.random.uniform(kb, (2 * dim_out,), dtype=dtype,
                               minval=-bound, maxval=bound)
        x = jax.random.normal(kx, (batch, seq, dim_in), dtype=dtype)
        return x, w, b

    k1, k2 = jax.random.split(key)

    # Small shape (exercises the zero-padding path: dims below one (8,128) tile).
    x, w, b = _make(k1, batch=2, seq=8, dim_in=32, dim_out=32)
    out = jax.block_until_ready(geglu(x, w, b))
    ref = _reference_geglu(x, w, b)
    assert out.shape == (2, 8, 32)
    assert jnp.allclose(out, ref, atol=1e-3, rtol=1e-3), "mismatch vs reference (small)"

    # Multi-block (2, 2, 2) grid exercising the K-axis accumulator (forced small tiles).
    x, w, b = _make(k2, batch=2, seq=128, dim_in=256, dim_out=256)
    out = jax.block_until_ready(geglu(x, w, b, tm=128, tn=128, tk=128))
    ref = _reference_geglu(x, w, b)
    assert out.shape == (2, 128, 256)
    assert jnp.allclose(out, ref, atol=1e-3, rtol=1e-3), "mismatch vs reference (tiled)"

    print("KERNEL_OK")
</pallas_src>

<mosaic_0001>
module attributes {stable_mosaic.version = 11 : i64} {
  func.func @_geglu_kernel(%arg0: i32, %arg1: i32, %arg2: i32, %arg3: memref<16x128xf32, #tpu.memory_space<vmem>>, %arg4: memref<128x128xf32, #tpu.memory_space<vmem>>, %arg5: memref<128x128xf32, #tpu.memory_space<vmem>>, %arg6: memref<1x128xf32, #tpu.memory_space<vmem>>, %arg7: memref<1x128xf32, #tpu.memory_space<vmem>>, %arg8: memref<16x128xf32, #tpu.memory_space<vmem>>, %arg9: memref<16x128xf32, #tpu.memory_space<vmem>>, %arg10: memref<16x128xf32, #tpu.memory_space<vmem>>) attributes {dimension_semantics = [#tpu.dimension_semantics<parallel>, #tpu.dimension_semantics<parallel>, #tpu.dimension_semantics<arbitrary>], iteration_bounds = array<i64: 1, 1, 1>, scalar_prefetch = 0 : i64, scratch_operands = 2 : i64, tpu.core_type = #tpu.core_type<tc>, window_params = [{transform_indices = @transform_0, window_bounds = array<i64: 16, 128>}, {transform_indices = @transform_1, window_bounds = array<i64: 128, 128>}, {transform_indices = @transform_2, window_bounds = array<i64: 128, 128>}, {transform_indices = @transform_3, window_bounds = array<i64: 1, 128>}, {transform_indices = @transform_4, window_bounds = array<i64: 1, 128>}, {transform_indices = @transform_5, window_bounds = array<i64: 16, 128>}]} {
    %c0_i32 = arith.constant 0 : i32
    %0 = arith.cmpi eq, %arg2, %c0_i32 : i32
    %1 = arith.extui %0 : i1 to i32
    %c0_i32_0 = arith.constant 0 : i32
    %2 = arith.cmpi ne, %1, %c0_i32_0 : i32
    scf.if %2 {
      %cst_17 = arith.constant 0.000000e+00 : f32
      %17 = vector.broadcast %cst_17 : f32 to vector<16x128xf32>
      %c0_18 = arith.constant 0 : index
      %c0_19 = arith.constant 0 : index
      %18 = vector.load %arg9[%c0_18, %c0_19] : memref<16x128xf32, #tpu.memory_space<vmem>>, vector<16x128xf32>
      tpu.vector_store %arg9[%c0_18, %c0_19], %17 {strides = array<i32>} : memref<16x128xf32, #tpu.memory_space<vmem>>, vector<16x128xf32>,
      %cst_20 = arith.constant 0.000000e+00 : f32
      %19 = vector.broadcast %cst_20 : f32 to vector<16x128xf32>
      %c0_21 = arith.constant 0 : index
      %c0_22 = arith.constant 0 : index
      %20 = vector.load %arg10[%c0_21, %c0_22] : memref<16x128xf32, #tpu.memory_space<vmem>>, vector<16x128xf32>
      tpu.vector_store %arg10[%c0_21, %c0_22], %19 {strides = array<i32>} : memref<16x128xf32, #tpu.memory_space<vmem>>, vector<16x128xf32>,
    } else {
    }
    %c0 = arith.constant 0 : index
    %c0_1 = arith.constant 0 : index
    %3 = vector.load %arg3[%c0, %c0_1] : memref<16x128xf32, #tpu.memory_space<vmem>>, vector<16x128xf32>
    %c0_2 = arith.constant 0 : index
    %c0_3 = arith.constant 0 : index
    %4 = vector.load %arg9[%c0_2, %c0_3] : memref<16x128xf32, #tpu.memory_space<vmem>>, vector<16x128xf32>
    %c0_4 = arith.constant 0 : index
    %c0_5 = arith.constant 0 : index
    %5 = vector.load %arg4[%c0_4, %c0_5] : memref<128x128xf32, #tpu.memory_space<vmem>>, vector<128x128xf32>
    %cst = arith.constant dense<0.000000e+00> : vector<16x128xf32>
    %6 = tpu.matmul %3, %5, %cst {dimension_numbers = #tpu.dot_dimension_numbers<[1], [1], [0], [0], [0, 0, 1, 0], [], []>} : vector<16x128xf32>, vector<128x128xf32>, vector<16x128xf32> -> vector<16x128xf32>
    %7 = arith.addf %4, %6 : vector<16x128xf32>
    %c0_6 = arith.constant 0 : index
    %c0_7 = arith.constant 0 : index
    %8 = vector.load %arg9[%c0_6, %c0_7] : memref<16x128xf32, #tpu.memory_space<vmem>>, vector<16x128xf32>
    tpu.vector_store %arg9[%c0_6, %c0_7], %7 {strides = array<i32>} : memref<16x128xf32, #tpu.memory_space<vmem>>, vector<16x128xf32>,
    %c0_8 = arith.constant 0 : index
    %c0_9 = arith.constant 0 : index
    %9 = vector.load %arg10[%c0_8, %c0_9] : memref<16x128xf32, #tpu.memory_space<vmem>>, vector<16x128xf32>
    %c0_10 = arith.constant 0 : index
    %c0_11 = arith.constant 0 : index
    %10 = vector.load %arg5[%c0_10, %c0_11] : memref<128x128xf32, #tpu.memory_space<vmem>>, vector<128x128xf32>
    %cst_12 = arith.constant dense<0.000000e+00> : vector<16x128xf32>
    %11 = tpu.matmul %3, %10, %cst_12 {dimension_numbers = #tpu.dot_dimension_numbers<[1], [1], [0], [0], [0, 0, 1, 0], [], []>} : vector<16x128xf32>, vector<128x128xf32>, vector<16x128xf32> -> vector<16x128xf32>
    %12 = arith.addf %9, %11 : vector<16x128xf32>
    %c0_13 = arith.constant 0 : index
    %c0_14 = arith.constant 0 : index
    %13 = vector.load %arg10[%c0_13, %c0_14] : memref<16x128xf32, #tpu.memory_space<vmem>>, vector<16x128xf32>
    tpu.vector_store %arg10[%c0_13, %c0_14], %12 {strides = array<i32>} : memref<16x128xf32, #tpu.memory_space<vmem>>, vector<16x128xf32>,
    %c0_i32_15 = arith.constant 0 : i32
    %14 = arith.cmpi eq, %arg2, %c0_i32_15 : i32
    %15 = arith.extui %14 : i1 to i32
    %c0_i32_16 = arith.constant 0 : i32
    %16 = arith.cmpi ne, %15, %c0_i32_16 : i32
    scf.if %16 {
      %c0_17 = arith.constant 0 : index
      %c0_18 = arith.constant 0 : index
      %17 = vector.load %arg9[%c0_17, %c0_18] : memref<16x128xf32, #tpu.memory_space<vmem>>, vector<16x128xf32>
      %c0_19 = arith.constant 0 : index
      %c0_20 = arith.constant 0 : index
      %18 = vector.load %arg6[%c0_19, %c0_20] : memref<1x128xf32, #tpu.memory_space<vmem>>, vector<1x128xf32>
      %19 = vector.broadcast %18 : vector<1x128xf32> to vector<16x128xf32>
      %20 = arith.addf %17, %19 : vector<16x128xf32>
      %c0_21 = arith.constant 0 : index
      %c0_22 = arith.constant 0 : index
      %21 = vector.load %arg10[%c0_21, %c0_22] : memref<16x128xf32, #tpu.memory_space<vmem>>, vector<16x128xf32>
      %c0_23 = arith.constant 0 : index
      %c0_24 = arith.constant 0 : index
      %22 = vector.load %arg7[%c0_23, %c0_24] : memref<1x128xf32, #tpu.memory_space<vmem>>, vector<1x128xf32>
      %23 = vector.broadcast %22 : vector<1x128xf32> to vector<16x128xf32>
      %24 = arith.addf %21, %23 : vector<16x128xf32>
      %cst_25 = arith.constant 5.000000e-01 : f32
      %25 = vector.broadcast %cst_25 : f32 to vector<16x128xf32>
      %26 = arith.mulf %25, %24 : vector<16x128xf32>
      %cst_26 = arith.constant 0.707106769 : f32
      %27 = vector.broadcast %cst_26 : f32 to vector<16x128xf32>
      %28 = arith.mulf %24, %27 : vector<16x128xf32>
      %29 = math.erf %28 : vector<16x128xf32>
      %cst_27 = arith.constant 1.000000e+00 : f32
      %30 = vector.broadcast %cst_27 : f32 to vector<16x128xf32>
      %31 = arith.addf %30, %29 : vector<16x128xf32>
      %32 = arith.mulf %26, %31 : vector<16x128xf32>
      %33 = arith.mulf %20, %32 : vector<16x128xf32>
      %c0_28 = arith.constant 0 : index
      %c0_29 = arith.constant 0 : index
      %34 = vector.load %arg8[%c0_28, %c0_29] : memref<16x128xf32, #tpu.memory_space<vmem>>, vector<16x128xf32>
      tpu.vector_store %arg8[%c0_28, %c0_29], %33 {strides = array<i32>} : memref<16x128xf32, #tpu.memory_space<vmem>>, vector<16x128xf32>,
    } else {
    }
    return
  }
  func.func @transform_0(%arg0: i32, %arg1: i32, %arg2: i32) -> (i32, i32) {
    %c0_i32 = arith.constant 0 : i32
    return %arg0, %arg2 : i32, i32
  }
  func.func @transform_1(%arg0: i32, %arg1: i32, %arg2: i32) -> (i32, i32) {
    %c0_i32 = arith.constant 0 : i32
    return %arg1, %arg2 : i32, i32
  }
  func.func @transform_2(%arg0: i32, %arg1: i32, %arg2: i32) -> (i32, i32) {
    %c1_i32 = arith.constant 1 : i32
    %0 = arith.addi %arg1, %c1_i32 : i32
    %c0_i32 = arith.constant 0 : i32
    return %0, %arg2 : i32, i32
  }
  func.func @transform_3(%arg0: i32, %arg1: i32, %arg2: i32) -> (i32, i32) {
    %c0_i32 = arith.constant 0 : i32
    %c0_i32_0 = arith.constant 0 : i32
    return %c0_i32, %arg1 : i32, i32
  }
  func.func @transform_4(%arg0: i32, %arg1: i32, %arg2: i32) -> (i32, i32) {
    %c1_i32 = arith.constant 1 : i32
    %0 = arith.addi %arg1, %c1_i32 : i32
    %c0_i32 = arith.constant 0 : i32
    %c0_i32_0 = arith.constant 0 : i32
    return %c0_i32, %0 : i32, i32
  }
  func.func @transform_5(%arg0: i32, %arg1: i32, %arg2: i32) -> (i32, i32) {
    %c0_i32 = arith.constant 0 : i32
    return %arg0, %arg1 : i32, i32
  }
}

</mosaic_0001>

<bundles_post_ra>
// kernel: tpu_custom_call.1
= control target key start
LH: loop header
LB: loop body
LE: loop exit
PB: predicated region body
PF: predicated region fallthrough
CT: control target
= control target key end

     0   :  { %10 = vsyncpa [#allocation5], 0  ;;  %s736_s0 = inlined_call_operand.hbm [shape: f32[16,128], index: 0, kind: input, shape index: {}]   ;;  %s737_s1 = inlined_call_operand.hbm [shape: f32[256,128], index: 1, kind: input, shape index: {}]   ;;  %s738_s2 = inlined_call_operand.hbm [shape: f32[256,128], index: 2, kind: input, shape index: {}]   ;;  %s739_s3 = inlined_call_operand.vmem [shape: f32[1,256], index: 3, kind: input, shape index: {}]   ;;  %s740_s4 = inlined_call_operand.vmem [shape: f32[1,256], index: 4, kind: input, shape index: {}]   ;;  %s741_s5 = inlined_call_operand.hbm [shape: f32[16,128], index: 5, kind: output, shape index: {}]  }
   0x1   :  { %11 = vsyncpa [#allocation8], 0 }
   0x2   :  { %12 = vsyncpa [#allocation6], 0  ;;  %s627_s18 = smov [#allocation7]   ;;  %s628_s20 = smov [#allocation4]  }
   0x3   :  { %s30_s19 = sshll.u32 %s627_s18, 4  ;;  %s18_s21 = sshll.u32 %s628_s20, 4  ;;  %s31_s19 = int_to_ptr.vmem [resolvable:$true] %s30_s19  ;;  %s663_s21 = int_to_ptr.vmem [resolvable:$true] %s18_s21 }
   0x4   :  { %s530_s24 = scalar_lea.hbm %s737_s1, 2048  ;;  %s532_s29 = scalar_lea.hbm %s737_s1, 4096 }
   0x5   :  { %p531_p0 = scmp.ne.s32.totalorder %s737_s1, %s530_s24  ;;  %p533_p1 = scmp.lt.u32.totalorder %s532_s29, %s530_s24 }
   0x6   :  { %p534_p2 = scmp.lt.u32.totalorder %s530_s24, %s737_s1 }
   0x8   :  { %p535_p3 = por %p534_p2, %p533_p1 }
   0xa   :  { %p536_p4 = pnand %p535_p3, %p531_p0 }
   0xc   :  { %539 = shalt.err (!%p536_p4)
}
   0xd   :  { %s540_s7 = scalar_lea.vmem %s31_s19, 2048  ;;  %p545_p6 = scmp.lt.s32.totalorder %s31_s19, %s31_s19 }
   0xe   :  { %p541_p5 = scmp.ne.s32.totalorder %s31_s19, %s540_s7  ;;  %p546_p7 = scmp.lt.s32.totalorder %s540_s7, %s540_s7 }
  0x10   :  { %p547_p8 = por %p546_p7, %p545_p6 }
  0x12   :  { %p548_p9 = pnand %p547_p8, %p541_p5 }
  0x14   :  { %551 = shalt.err (!%p548_p9)
}
  0x15   :  { %s629_s8 = smov 128   ;;  %s630_s9 = smov 8  }
  0x16   :  { %36 = dma.hbm_to_vmem [thread:$0]  %s737_s1, 2048, %s31_s19, [#allocation8], %s629_s8, %s629_s8, %s630_s9  }
  0x17   :  { %s552_s14 = scalar_lea.hbm %s736_s0, 256 }
  0x18   :  { %p553_p10 = scmp.ne.s32.totalorder %s736_s0, %s552_s14  ;;  %p556_p11 = scmp.lt.u32.totalorder %s552_s14, %s736_s0 }
  0x1a   :  { %p558_p12 = pnand %p556_p11, %p553_p10 }
  0x1c   :  { %561 = shalt.err (!%p558_p12)
}
  0x1d   :  { %s562_s20 = scalar_lea.vmem %s663_s21, 256  ;;  %p567_p0 = scmp.lt.s32.totalorder %s663_s21, %s663_s21 }
  0x1e   :  { %p563_p13 = scmp.ne.s32.totalorder %s663_s21, %s562_s20  ;;  %p568_p1 = scmp.lt.s32.totalorder %s562_s20, %s562_s20 }
  0x20   :  { %p569_p2 = por %p568_p1, %p567_p0 }
  0x22   :  { %p570_p3 = pnand %p569_p2, %p563_p13 }
  0x24   :  { %573 = shalt.err (!%p570_p3)
}
  0x25   :  { %24 = dma.hbm_to_vmem [thread:$0]  %s736_s0, 256, %s663_s21, [#allocation5], %s629_s8, %s629_s8, %s630_s9  }
  0x26   :  { %s343_s24 = scalar_lea.hbm %s738_s2, 2048  ;;  %s631_s25 = smov [#allocation9]  }
  0x27   :  { %s46_s26 = sshll.u32 %s631_s25, 4  ;;  %s598_s29 = scalar_lea.hbm %s738_s2, 4096  ;;  %s47_s26 = int_to_ptr.vmem [resolvable:$true] %s46_s26 }
  0x28   :  { %p575_p4 = scmp.ne.s32.totalorder %s343_s24, %s598_s29  ;;  %p577_p5 = scmp.lt.u32.totalorder %s343_s24, %s738_s2 }
  0x29   :  { %p578_p6 = scmp.lt.u32.totalorder %s598_s29, %s598_s29  ;;  %p580_p8 = scmp.lt.u32.totalorder %s598_s29, %s343_s24 }
  0x2b   :  { %p579_p7 = por %p578_p6, %p577_p5 }
  0x2d   :  { %p581_p9 = por %p580_p8, %p579_p7 }
  0x2f   :  { %p582_p10 = pnand %p581_p9, %p575_p4 }
  0x31   :  { %585 = shalt.err (!%p582_p10)
}
  0x32   :  { %s586_s0 = scalar_lea.vmem %s47_s26, 2048  ;;  %p591_p12 = scmp.lt.s32.totalorder %s47_s26, %s47_s26 }
  0x33   :  { %p587_p11 = scmp.ne.s32.totalorder %s47_s26, %s586_s0  ;;  %p592_p13 = scmp.lt.s32.totalorder %s586_s0, %s586_s0 }
  0x35   :  { %p593_p0 = por %p592_p13, %p591_p12 }
  0x37   :  { %p594_p1 = pnand %p593_p0, %p587_p11 }
  0x39   :  { %597 = shalt.err (!%p594_p1)
}
  0x3a   :  { %52 = dma.hbm_to_vmem [thread:$0]  %s343_s24, 2048, %s47_s26, [#allocation8], %s629_s8, %s629_s8, %s630_s9  }
  0x3b   :  { %621 = dma.done.wait [#allocation5], 256  }
  0x3c   :  { %622 = vsyncadd [#allocation5], 4294967040 }
  0x3d   :  { %623 = dma.done.wait [#allocation8], 4096  }
  0x3e   :  { %624 = vsyncadd [#allocation8], 4294963200  ;;  %v191_v0 = vld [vmem:[#allocation9] sm:$0xff]  ;;  %v192_v1 = vld [vmem:[#allocation9 + $0x8] sm:$0xff] }
  0x3f   :  { %v193_v2 = vld [vmem:[#allocation9 + $0x10] sm:$0xff]  ;;  %v488_v3 = vpack.c.bf16 %v192_v1, %v191_v0  ;;  %v194_v4 = vld [vmem:[#allocation9 + $0x18] sm:$0xff]  ;;  %v94_v5 = vld [vmem:[#allocation7] sm:$0xff] }
  0x40   :  { %v95_v6 = vld [vmem:[#allocation7 + $0x8] sm:$0xff]  ;;  %v492_v7 = vpack.c.bf16 %v194_v4, %v193_v2  ;;  %v96_v9 = vld [vmem:[#allocation7 + $0x10] sm:$0xff]  ;;  %v97_v10 = vld [vmem:[#allocation7 + $0x18] sm:$0xff] }
  0x41   :  { %v456_v8 = vpack.c.bf16 %v95_v6, %v94_v5  ;;  %489 = vmatprep.subr.bf16.mxu1 %v488_v3  ;;  %v460_v11 = vpack.c.bf16 %v97_v10, %v96_v9  ;;  %v195_v12 = vld [vmem:[#allocation9 + $0x20] sm:$0xff]  ;;  %v196_v13 = vld [vmem:[#allocation9 + $0x28] sm:$0xff]  ;;  %v90_v17 = vld [vmem:[#allocation4] sm:$0xff] }
  0x42   :  { %491 = vmatpush3.bf16.xpose.msra.mxu1 %v488_v3  ;;  %v98_v14 = vld [vmem:[#allocation7 + $0x20] sm:$0xff]  ;;  %v99_v15 = vld [vmem:[#allocation7 + $0x28] sm:$0xff]  ;;  %v496_v16 = vpack.c.bf16 %v196_v13, %v195_v12  ;;  %453 = vmatprep.mubr.f32.mxu1 %v90_v17  ;;  %v197_v19 = vld [vmem:[#allocation9 + $0x30] sm:$0xff] }
  0x43   :  { %457 = vmatprep.subr.bf16.mxu0 %v456_v8  ;;  %493 = vmatprep.subr.bf16.mxu1 %v492_v7  ;;  %v464_v18 = vpack.c.bf16 %v99_v15, %v98_v14  ;;  %v198_v20 = vld [vmem:[#allocation9 + $0x38] sm:$0xff]  ;;  %v100_v21 = vld [vmem:[#allocation7 + $0x30] sm:$0xff]  ;;  %v199_v25 = vld [vmem:[#allocation9 + $0x40] sm:$0xff] }
  0x44   :  { %459 = vmatpush3.bf16.xpose.msra.mxu0 %v456_v8  ;;  %418 = vmatprep.mubr.f32.mxu0 %v90_v17  ;;  %v101_v22 = vld [vmem:[#allocation7 + $0x38] sm:$0xff]  ;;  %v500_v23 = vpack.c.bf16 %v198_v20, %v197_v19  ;;  %v200_v26 = vld [vmem:[#allocation9 + $0x48] sm:$0xff]  ;;  %v102_v27 = vld [vmem:[#allocation7 + $0x40] sm:$0xff] }
  0x45   :  { %461 = vmatprep.subr.bf16.mxu0 %v460_v11  ;;  %v468_v24 = vpack.c.bf16 %v101_v22, %v100_v21  ;;  %v103_v28 = vld [vmem:[#allocation7 + $0x48] sm:$0xff]  ;;  %v504_v29 = vpack.c.bf16 %v200_v26, %v199_v25  ;;  %v201_v31 = vld [vmem:[#allocation9 + $0x50] sm:$0xff]  ;;  %v202_v32 = vld [vmem:[#allocation9 + $0x58] sm:$0xff] }
  0x46   :  { %v472_v30 = vpack.c.bf16 %v103_v28, %v102_v27  ;;  %v104_v33 = vld [vmem:[#allocation7 + $0x50] sm:$0xff]  ;;  %v105_v34 = vld [vmem:[#allocation7 + $0x58] sm:$0xff]  ;;  %v508_v35 = vpack.c.bf16 %v202_v32, %v201_v31  ;;  %v203_v37 = vld [vmem:[#allocation9 + $0x60] sm:$0xff] }
  0x47   :  { %v476_v36 = vpack.c.bf16 %v105_v34, %v104_v33  ;;  %v204_v38 = vld [vmem:[#allocation9 + $0x68] sm:$0xff]  ;;  %v106_v39 = vld [vmem:[#allocation7 + $0x60] sm:$0xff]  ;;  %v205_v43 = vld [vmem:[#allocation9 + $0x70] sm:$0xff] }
  0x48   :  { %v107_v40 = vld [vmem:[#allocation7 + $0x68] sm:$0xff]  ;;  %v512_v41 = vpack.c.bf16 %v204_v38, %v203_v37  ;;  %v206_v44 = vld [vmem:[#allocation9 + $0x78] sm:$0xff]  ;;  %v108_v45 = vld [vmem:[#allocation7 + $0x70] sm:$0xff] }
  0x49   :  { %v480_v42 = vpack.c.bf16 %v107_v40, %v106_v39  ;;  %v109_v46 = vld [vmem:[#allocation7 + $0x78] sm:$0xff]  ;;  %v516_v47 = vpack.c.bf16 %v206_v44, %v205_v43  ;;  %v349_v50 = vld [vmem:[%s740_s4 + $0x1] ss:$0 sm:$0xff]  ;;  %v347_v59 = vld [vmem:[%s739_s3] ss:$0 sm:$0xff]  ;;  %s632_s4 = smov [#allocation10]  }
  0x4a   :  { %495 = vmatpush3.bf16.xpose.msra.mxu1 %v492_v7  ;;  %v484_v48 = vpack.c.bf16 %v109_v46, %v108_v45  ;;  %v91_v49 = vld [vmem:[#allocation4 + $0x8] sm:$0xff]  ;;  %s330_s11 = sshll.u32 %s632_s4, 4  ;;  %s331_s11 = int_to_ptr.vmem [resolvable:$true] %s330_s11 }
  0x4b   :  { %497 = vmatprep.subr.bf16.mxu1 %v496_v16  ;;  %s599_s12 = scalar_lea.vmem %s331_s11, 256  ;;  %p604_p3 = scmp.lt.s32.totalorder %s331_s11, %s331_s11 }
  0x4c   :  { %463 = vmatpush3.bf16.xpose.msra.mxu0 %v460_v11  ;;  %p600_p2 = scmp.ne.s32.totalorder %s331_s11, %s599_s12  ;;  %p605_p4 = scmp.lt.s32.totalorder %s599_s12, %s599_s12 }
  0x4d   :  { %465 = vmatprep.subr.bf16.mxu0 %v464_v18 }
  0x4e   :  { %p606_p5 = por %p605_p4, %p604_p3 }
  0x50   :  { %p607_p6 = pnand %p606_p5, %p600_p2 }
  0x52   :  { %499 = vmatpush3.bf16.xpose.msra.mxu1 %v496_v16 }
  0x53   :  { %501 = vmatprep.subr.bf16.mxu1 %v500_v23 }
  0x54   :  { %467 = vmatpush3.bf16.xpose.msra.mxu0 %v464_v18 }
  0x55   :  { %469 = vmatprep.subr.bf16.mxu0 %v468_v24 }
  0x5a   :  { %503 = vmatpush3.bf16.xpose.msra.mxu1 %v500_v23 }
  0x5b   :  { %505 = vmatprep.subr.bf16.mxu1 %v504_v29 }
  0x5c   :  { %471 = vmatpush3.bf16.xpose.msra.mxu0 %v468_v24 }
  0x5d   :  { %473 = vmatprep.subr.bf16.mxu0 %v472_v30 }
  0x62   :  { %507 = vmatpush3.bf16.xpose.msra.mxu1 %v504_v29 }
  0x63   :  { %509 = vmatprep.subr.bf16.mxu1 %v508_v35 }
  0x64   :  { %475 = vmatpush3.bf16.xpose.msra.mxu0 %v472_v30 }
  0x65   :  { %477 = vmatprep.subr.bf16.mxu0 %v476_v36 }
  0x6a   :  { %511 = vmatpush3.bf16.xpose.msra.mxu1 %v508_v35 }
  0x6b   :  { %513 = vmatprep.subr.bf16.mxu1 %v512_v41 }
  0x6c   :  { %479 = vmatpush3.bf16.xpose.msra.mxu0 %v476_v36 }
  0x6d   :  { %481 = vmatprep.subr.bf16.mxu0 %v480_v42 }
  0x72   :  { %515 = vmatpush3.bf16.xpose.msra.mxu1 %v512_v41 }
  0x73   :  { %517 = vmatprep.subr.bf16.mxu1 %v516_v47 }
  0x74   :  { %483 = vmatpush3.bf16.xpose.msra.mxu0 %v480_v42 }
  0x75   :  { %485 = vmatprep.subr.bf16.mxu0 %v484_v48 }
  0x7a   :  { %519 = vmatpush3.bf16.xpose.msra.mxu1 %v516_v47 }
  0x7c   :  { %487 = vmatpush3.bf16.xpose.msra.mxu0 %v484_v48 }
  0x81   :  { %454 = vmatmul.mubr.f32.vlgmr.msra.gmra.mrb[0].mxu1 %v91_v49 }
  0x83   :  { %419 = vmatmul.mubr.f32.vlgmr.msra.gmra.mrb[0].mxu0 %v91_v49 }
 0x154   :  { %v455_v51 = vpop.f32.mrb[0].mxu1 }
 0x155   :  { %v310_v52 = vadd.f32 %v455_v51, %v349_v50  ;;  %v273_v53 = vpop.f32.mrb[1].mxu1 }
 0x156   :  { %v420_v54 = vpop.f32.mrb[0].mxu0  ;;  %v309_v55 = vadd.f32 %v349_v50, %v273_v53 }
 0x157   :  { %v176_v56 = vpop.f32.mrb[1].mxu0  ;;  %v314_v57 = vmul.f32 0.70710677, %v310_v52  ;;  %v312_v62 = vmul.f32 0.5, %v310_v52  ;;  %v299_v0 = vadd.f32 %v420_v54, %v347_v59 }
 0x158   :  { %v313_v58 = vmul.f32 0.70710677, %v309_v55  ;;  %v311_v1 = vmul.f32 0.5, %v309_v55  ;;  %v298_v3 = vadd.f32 %v347_v59, %v176_v56 }
 0x159   :  { %526 = verf.f32 %v314_v57 }
 0x15a   :  { %528 = verf.f32 %v313_v58 }
 0x163   :  { %v527_v60 = vpop.eup %526 }
 0x164   :  { %v529_v61 = vpop.eup %528  ;;  %v318_v63 = vadd.f32 1.0, %v527_v60 }
 0x165   :  { %v317_v2 = vadd.f32 1.0, %v529_v61 }
 0x166   :  { %v320_v4 = vmul.f32 %v318_v63, %v312_v62 }
 0x167   :  { %v319_v5 = vmul.f32 %v317_v2, %v311_v1 }
 0x168   :  { %v322_v6 = vmul.f32 %v320_v4, %v299_v0 }
 0x169   :  { %v321_v7 = vmul.f32 %v319_v5, %v298_v3 }
 0x16a   :  { %324 = vst [vmem:[#allocation10 + $0x8] sm:$0xff] %v322_v6 }
 0x16b   :  { %323 = vst [vmem:[#allocation10] sm:$0xff] %v321_v7 }
 0x16c   :  { %610 = shalt.err (!%p607_p6)
}
 0x16d   :  { %s611_s14 = scalar_lea.hbm %s741_s5, 256 }
 0x16e   :  { %p612_p7 = scmp.ne.s32.totalorder %s741_s5, %s611_s14  ;;  %p615_p8 = scmp.lt.u32.totalorder %s611_s14, %s741_s5 }
 0x170   :  { %p617_p9 = pnand %p615_p8, %p612_p7 }
 0x172   :  { %620 = shalt.err (!%p617_p9)
}
 0x173   :  { %336 = dma.vmem_to_hbm [thread:$0]  %s331_s11, 256, %s741_s5, [#allocation6], %s629_s8, %s629_s8, %s630_s9  }
 0x174   :  { %625 = dma.done.wait [#allocation6], 256  }
 0x175   :  { %626 = vsyncadd [#allocation6], 4294967040 }
 0x176   :  { %340 = vsyncpa [#allocation5], 1 }
 0x177   :  { %341 = vsyncpa [#allocation8], 1 }
 0x178   :  { %342 = vsyncpa [#allocation6], 1 }

</bundles_post_ra>
